<compile_context>
chip_gen: v6e
topology: v6e:2x2x1
jax: 0.10.0
libtpu: 0.0.40
codegen_flags: <defaults>
</compile_context>

<pallas_src>
import jax
import jax.numpy as jnp
from jax import lax
from jax.experimental import pallas as pl
from jax.experimental.pallas import tpu as pltpu


def _make_kernel(n, tm, tn, need_edge):
    """n, tm, tn are Python ints; need_edge a Python bool (static)."""

    def kernel(s_ref, bcol_ref, brow_ref, rowmax_ref, colmax_ref):
        i = pl.program_id(0)   # row-tile index (parallel)
        j = pl.program_id(1)   # col-tile index (reduction for the per-row max)

        # Costs are clamped >= 0 and the diagonal is zeroed, so 0 is a valid
        # identity for the running max.
        @pl.when(j == 0)
        def _():
            rowmax_ref[...] = jnp.zeros_like(rowmax_ref)

        s = s_ref[...].astype(jnp.float32)           # (tm, tn) scores tile
        b_col = bcol_ref[...].astype(jnp.float32)    # (tm, 1)  diag - m (rows)
        b_row = brow_ref[...].astype(jnp.float32)    # (1, tn)  diag - m (cols)

        row0 = i * tm
        col0 = j * tn

        # Only tiles intersecting the diagonal (or the N boundary, when the
        # grid has partial edge blocks) need the iota/compare/select mask.
        needs_mask = jnp.logical_and(row0 < col0 + tn, col0 < row0 + tm)
        if need_edge:
            needs_mask = jnp.logical_or(
                needs_mask,
                jnp.logical_or(row0 + tm > n, col0 + tn > n))

        def plain():
            cs = jnp.maximum(s - b_col, 0.0)
            ci = jnp.maximum(s - b_row, 0.0)
            return (jnp.max(cs, axis=1, keepdims=True),
                    jnp.max(ci, axis=0, keepdims=True))

        def masked():
            row_ids = lax.broadcasted_iota(jnp.int32, (tm, tn), 0) + row0
            col_ids = lax.broadcasted_iota(jnp.int32, (tm, tn), 1) + col0
            kill = row_ids == col_ids
            if need_edge:
                kill = jnp.logical_or(
                    kill, jnp.logical_or(row_ids >= n, col_ids >= n))
            # where() is a select: safe even if edge-block padding is NaN/Inf.
            cs = jnp.where(kill, 0.0, jnp.maximum(s - b_col, 0.0))
            ci = jnp.where(kill, 0.0, jnp.maximum(s - b_row, 0.0))
            return (jnp.max(cs, axis=1, keepdims=True),
                    jnp.max(ci, axis=0, keepdims=True))

        row_part, col_part = lax.cond(needs_mask, masked, plain)

        # Running hardest-negative per row of this row block (carried over j;
        # the output block index (i, 0) is constant across j so it stays
        # VMEM-resident and is flushed when i advances).
        rowmax_ref[...] = jnp.maximum(rowmax_ref[...], row_part)
        # Per-(row-block, col-block) column maxima; reduced over i in XLA.
        colmax_ref[...] = col_part.reshape(1, 1, tn)

    return kernel


def contrastive_loss(scores: jax.Array, m: float, *,
                     block_rows=None, block_cols=None) -> jax.Array:
    """Pallas TPU contrastive loss (max_violation=True). `scores` is (N, N)."""
    n = scores.shape[0]
    assert scores.ndim == 2 and scores.shape[1] == n, "scores must be square"

    # Tile selection: whole matrix as one block for small N, lane-wide tiles
    # for large N (longer contiguous HBM bursts, lane-dense stores).
    if block_rows is None and block_cols is None:
        if n <= 1024:
            tm = tn = n
        else:
            tm, tn = 256, 2048
    else:
        tm = block_rows if block_rows is not None else n
        tn = block_cols if block_cols is not None else n
    if tm != n:
        assert tm % 8 == 0, "row tile must be a multiple of 8 (or equal N)"
    if tn != n:
        assert tn % 128 == 0, "col tile must be a multiple of 128 (or equal N)"

    n_i = pl.cdiv(n, tm)
    n_j = pl.cdiv(n, tn)
    need_edge = (n % tm != 0) or (n % tn != 0)

    # Margin folded into the diagonal vectors (tiny N-element op in XLA):
    #   cost = max(scores - (diag - m), 0)
    base = jnp.diagonal(scores).astype(jnp.float32) - float(m)
    b_col = base.reshape(n, 1)
    b_row = base.reshape(1, n)

    kernel = _make_kernel(n, tm, tn, need_edge)

    rowmax, colmax = pl.pallas_call(
        kernel,
        out_shape=(
            # per-row hardest-negative cost (padded rows stay 0)
            jax.ShapeDtypeStruct((n_i * tm, 1), jnp.float32),
            # per-(row-block, col) maxima; max over axis 0 done in XLA
            jax.ShapeDtypeStruct((n_i, 1, n_j * tn), jnp.float32),
        ),
        grid_spec=pltpu.PrefetchScalarGridSpec(
            num_scalar_prefetch=0,
            grid=(n_i, n_j),                                  # j innermost
            in_specs=[
                pl.BlockSpec((tm, tn), lambda i, j: (i, j)),  # scores tile
                pl.BlockSpec((tm, 1), lambda i, j: (i, 0)),   # diag-m (rows)
                pl.BlockSpec((1, tn), lambda i, j: (0, j)),   # diag-m (cols)
            ],
            out_specs=(
                pl.BlockSpec((tm, 1), lambda i, j: (i, 0)),
                pl.BlockSpec((1, 1, tn), lambda i, j: (i, 0, j)),
            ),
        ),
        compiler_params=pltpu.CompilerParams(
            # Nothing is carried across the row-tile axis anymore -> it can be
            # megacore-sharded on v7x; j carries the per-row running max.
            dimension_semantics=("parallel", "arbitrary"),
        ),
    )(scores, b_col, b_row)

    # Tiny final reduce in XLA (a few KB at most).
    return jnp.sum(rowmax) + jnp.sum(jnp.max(colmax, axis=0))


def _reference_loss(scores, m):
    """Pure-JAX reference mirroring the PyTorch forward (max_violation=True)."""
    n = scores.shape[0]
    scores = scores.astype(jnp.float32)
    diag = jnp.diag(scores).reshape(n, 1)
    cost_s = jnp.clip(m + scores - diag, 0.0, None)
    cost_im = jnp.clip(m + scores - diag.T, 0.0, None)
    eye = jnp.eye(n, dtype=bool)
    cost_s = jnp.where(eye, 0.0, cost_s)
    cost_im = jnp.where(eye, 0.0, cost_im)
    return jnp.sum(jnp.max(cost_s, axis=1)) + jnp.sum(jnp.max(cost_im, axis=0))


if __name__ == "__main__":
    margin = 0.2  # initial_margin from __init__, passed as `m` to forward

    # 1) Small batch, single-block path (matches the module's typical use).
    key = jax.random.PRNGKey(0)
    n1 = 8
    s1 = jax.random.normal(key, (n1, n1), dtype=jnp.float32)
    out1 = jax.block_until_ready(contrastive_loss(s1, margin))
    ref1 = _reference_loss(s1, margin)
    assert jnp.allclose(out1, ref1, rtol=1e-5, atol=1e-4), (out1, ref1)

    # 2) Tiled + partial-edge-block path: N=160, 128x128 tiles -> grid (2, 2),
    #    no wrapper-side pad (edge blocks handled by the in-kernel mask).
    k2 = jax.random.PRNGKey(1)
    n2 = 160
    s2 = jax.random.normal(k2, (n2, n2), dtype=jnp.float32)
    out2 = jax.block_until_ready(
        contrastive_loss(s2, margin, block_rows=128, block_cols=128))
    ref2 = _reference_loss(s2, margin)
    assert jnp.allclose(out2, ref2, rtol=1e-5, atol=1e-3), (out2, ref2)

    # 3) bf16 input path (HBM traffic halved; math is f32 inside the kernel).
    s3 = s1.astype(jnp.bfloat16)
    out3 = jax.block_until_ready(contrastive_loss(s3, margin))
    ref3 = _reference_loss(s3.astype(jnp.float32), margin)
    assert jnp.allclose(out3, ref3, rtol=1e-4, atol=1e-3), (out3, ref3)

    print("KERNEL_OK")
</pallas_src>

<mosaic_0001>
module attributes {stable_mosaic.version = 11 : i64} {
  func.func @kernel(%arg0: i32, %arg1: i32, %arg2: memref<8x8xf32, #tpu.memory_space<vmem>>, %arg3: memref<8x1xf32, #tpu.memory_space<vmem>>, %arg4: memref<1x8xf32, #tpu.memory_space<vmem>>, %arg5: memref<8x1xf32, #tpu.memory_space<vmem>>, %arg6: memref<1x1x8xf32, #tpu.memory_space<vmem>>) attributes {dimension_semantics = [#tpu.dimension_semantics<parallel>, #tpu.dimension_semantics<arbitrary>], iteration_bounds = array<i64: 1, 1>, scalar_prefetch = 0 : i64, scratch_operands = 0 : i64, tpu.core_type = #tpu.core_type<tc>, window_params = [{transform_indices = @transform_0, window_bounds = array<i64: 8, 8>}, {transform_indices = @transform_1, window_bounds = array<i64: 8, 1>}, {transform_indices = @transform_2, window_bounds = array<i64: 1, 8>}, {transform_indices = @transform_3, window_bounds = array<i64: 8, 1>}, {transform_indices = @transform_4, window_bounds = array<i64: 1, 1, 8>}]} {
    %c0_i32 = arith.constant 0 : i32
    %0 = arith.cmpi eq, %arg1, %c0_i32 : i32
    %1 = arith.extui %0 : i1 to i32
    %c0_i32_0 = arith.constant 0 : i32
    %2 = arith.cmpi ne, %1, %c0_i32_0 : i32
    scf.if %2 {
      %cst = arith.constant 0.000000e+00 : f32
      %21 = vector.broadcast %cst : f32 to vector<8x1xf32>
      %c0_17 = arith.constant 0 : index
      %c0_18 = arith.constant 0 : index
      %22 = vector.load %arg5[%c0_17, %c0_18] : memref<8x1xf32, #tpu.memory_space<vmem>>, vector<8x1xf32>
      tpu.vector_store %arg5[%c0_17, %c0_18], %21 {strides = array<i32>} : memref<8x1xf32, #tpu.memory_space<vmem>>, vector<8x1xf32>,
    } else {
    }
    %c0 = arith.constant 0 : index
    %c0_1 = arith.constant 0 : index
    %3 = vector.load %arg2[%c0, %c0_1] : memref<8x8xf32, #tpu.memory_space<vmem>>, vector<8x8xf32>
    %c0_2 = arith.constant 0 : index
    %c0_3 = arith.constant 0 : index
    %4 = vector.load %arg3[%c0_2, %c0_3] : memref<8x1xf32, #tpu.memory_space<vmem>>, vector<8x1xf32>
    %c0_4 = arith.constant 0 : index
    %c0_5 = arith.constant 0 : index
    %5 = vector.load %arg4[%c0_4, %c0_5] : memref<1x8xf32, #tpu.memory_space<vmem>>, vector<1x8xf32>
    %c8_i32 = arith.constant 8 : i32
    %6 = arith.muli %arg0, %c8_i32 : i32
    %c8_i32_6 = arith.constant 8 : i32
    %7 = arith.muli %arg1, %c8_i32_6 : i32
    %c8_i32_7 = arith.constant 8 : i32
    %8 = arith.addi %7, %c8_i32_7 : i32
    %9 = arith.cmpi slt, %6, %8 : i32
    %c8_i32_8 = arith.constant 8 : i32
    %10 = arith.addi %6, %c8_i32_8 : i32
    %11 = arith.cmpi slt, %7, %10 : i32
    %12 = arith.andi %9, %11 : i1
    %13 = arith.extui %12 : i1 to i32
    %c0_i32_9 = arith.constant 0 : i32
    %14 = arith.cmpi ne, %13, %c0_i32_9 : i32
    %15:2 = scf.if %14 -> (vector<8x1xf32>, vector<1x8xf32>) {
      %21 = tpu.iota {dimensions = array<i32: 0>} : vector<8x8xi32>
      %22 = vector.broadcast %6 : i32 to vector<8x8xi32>
      %23 = arith.addi %21, %22 : vector<8x8xi32>
      %24 = tpu.iota {dimensions = array<i32: 1>} : vector<8x8xi32>
      %25 = vector.broadcast %7 : i32 to vector<8x8xi32>
      %26 = arith.addi %24, %25 : vector<8x8xi32>
      %27 = arith.cmpi eq, %23, %26 : vector<8x8xi32>
      %28 = vector.broadcast %4 : vector<8x1xf32> to vector<8x8xf32>
      %29 = arith.subf %3, %28 : vector<8x8xf32>
      %cst = arith.constant 0.000000e+00 : f32
      %30 = vector.broadcast %cst : f32 to vector<8x8xf32>
      %31 = arith.maximumf %29, %30 : vector<8x8xf32>
      %cst_17 = arith.constant 0.000000e+00 : f32
      %32 = vector.broadcast %cst_17 : f32 to vector<8x8xf32>
      %33 = arith.select %27, %32, %31 : vector<8x8xi1>, vector<8x8xf32>
      %34 = vector.broadcast %5 : vector<1x8xf32> to vector<8x8xf32>
      %35 = arith.subf %3, %34 : vector<8x8xf32>
      %cst_18 = arith.constant 0.000000e+00 : f32
      %36 = vector.broadcast %cst_18 : f32 to vector<8x8xf32>
      %37 = arith.maximumf %35, %36 : vector<8x8xf32>
      %cst_19 = arith.constant 0.000000e+00 : f32
      %38 = vector.broadcast %cst_19 : f32 to vector<8x8xf32>
      %39 = arith.select %27, %38, %37 : vector<8x8xi1>, vector<8x8xf32>
      %cst_20 = arith.constant dense<0xFF800000> : vector<8xf32>
      %40 = vector.multi_reduction <maximumf>, %33, %cst_20 [1] : vector<8x8xf32> to vector<8xf32>
      %41 = vector.shape_cast %40 : vector<8xf32> to vector<8x1xf32>
      %cst_21 = arith.constant dense<0xFF800000> : vector<8xf32>
      %42 = vector.multi_reduction <maximumf>, %39, %cst_21 [0] : vector<8x8xf32> to vector<8xf32>
      %43 = vector.shape_cast %42 : vector<8xf32> to vector<1x8xf32>
      scf.yield %41, %43 : vector<8x1xf32>, vector<1x8xf32>
    } else {
      %21 = vector.broadcast %4 : vector<8x1xf32> to vector<8x8xf32>
      %22 = arith.subf %3, %21 : vector<8x8xf32>
      %cst = arith.constant 0.000000e+00 : f32
      %23 = vector.broadcast %cst : f32 to vector<8x8xf32>
      %24 = arith.maximumf %22, %23 : vector<8x8xf32>
      %25 = vector.broadcast %5 : vector<1x8xf32> to vector<8x8xf32>
      %26 = arith.subf %3, %25 : vector<8x8xf32>
      %cst_17 = arith.constant 0.000000e+00 : f32
      %27 = vector.broadcast %cst_17 : f32 to vector<8x8xf32>
      %28 = arith.maximumf %26, %27 : vector<8x8xf32>
      %cst_18 = arith.constant dense<0xFF800000> : vector<8xf32>
      %29 = vector.multi_reduction <maximumf>, %24, %cst_18 [1] : vector<8x8xf32> to vector<8xf32>
      %30 = vector.shape_cast %29 : vector<8xf32> to vector<8x1xf32>
      %cst_19 = arith.constant dense<0xFF800000> : vector<8xf32>
      %31 = vector.multi_reduction <maximumf>, %28, %cst_19 [0] : vector<8x8xf32> to vector<8xf32>
      %32 = vector.shape_cast %31 : vector<8xf32> to vector<1x8xf32>
      scf.yield %30, %32 : vector<8x1xf32>, vector<1x8xf32>
    }
    %c0_10 = arith.constant 0 : index
    %c0_11 = arith.constant 0 : index
    %16 = vector.load %arg5[%c0_10, %c0_11] : memref<8x1xf32, #tpu.memory_space<vmem>>, vector<8x1xf32>
    %17 = arith.maximumf %16, %15#0 : vector<8x1xf32>
    %c0_12 = arith.constant 0 : index
    %c0_13 = arith.constant 0 : index
    %18 = vector.load %arg5[%c0_12, %c0_13] : memref<8x1xf32, #tpu.memory_space<vmem>>, vector<8x1xf32>
    tpu.vector_store %arg5[%c0_12, %c0_13], %17 {strides = array<i32>} : memref<8x1xf32, #tpu.memory_space<vmem>>, vector<8x1xf32>,
    %19 = vector.shape_cast %15#1 : vector<1x8xf32> to vector<1x1x8xf32>
    %c0_14 = arith.constant 0 : index
    %c0_15 = arith.constant 0 : index
    %c0_16 = arith.constant 0 : index
    %20 = vector.load %arg6[%c0_14, %c0_15, %c0_16] : memref<1x1x8xf32, #tpu.memory_space<vmem>>, vector<1x1x8xf32>
    tpu.vector_store %arg6[%c0_14, %c0_15, %c0_16], %19 {strides = array<i32>} : memref<1x1x8xf32, #tpu.memory_space<vmem>>, vector<1x1x8xf32>,
    return
  }
  func.func @transform_0(%arg0: i32, %arg1: i32) -> (i32, i32) {
    %c0_i32 = arith.constant 0 : i32
    return %arg0, %arg1 : i32, i32
  }
  func.func @transform_1(%arg0: i32, %arg1: i32) -> (i32, i32) {
    %c0_i32 = arith.constant 0 : i32
    %c0_i32_0 = arith.constant 0 : i32
    return %arg0, %c0_i32 : i32, i32
  }
  func.func @transform_2(%arg0: i32, %arg1: i32) -> (i32, i32) {
    %c0_i32 = arith.constant 0 : i32
    %c0_i32_0 = arith.constant 0 : i32
    return %c0_i32, %arg1 : i32, i32
  }
  func.func @transform_3(%arg0: i32, %arg1: i32) -> (i32, i32) {
    %c0_i32 = arith.constant 0 : i32
    %c0_i32_0 = arith.constant 0 : i32
    return %arg0, %c0_i32 : i32, i32
  }
  func.func @transform_4(%arg0: i32, %arg1: i32) -> (i32, i32, i32) {
    %c0_i32 = arith.constant 0 : i32
    %c0_i32_0 = arith.constant 0 : i32
    return %arg0, %c0_i32, %arg1 : i32, i32, i32
  }
}

</mosaic_0001>

<bundles_post_ra>
// kernel: tpu_custom_call.1
= control target key start
LH: loop header
LB: loop body
LE: loop exit
PB: predicated region body
PF: predicated region fallthrough
CT: control target
= control target key end

     0   :  { %v157_v1 = vmov 0   ;;  %s208_s0 = inlined_call_operand.vmem [shape: f32[8,8], index: 0, kind: input, shape index: {}]   ;;  %s209_s1 = inlined_call_operand.vmem [shape: f32[8,1], index: 1, kind: input, shape index: {}]   ;;  %s210_s2 = inlined_call_operand.vmem [shape: f32[1,8], index: 2, kind: input, shape index: {}]   ;;  %s211_s3 = inlined_call_operand.vmem [shape: f32[8,1], index: 3, kind: output, shape index: {0}]   ;;  %s212_s4 = inlined_call_operand.hbm [shape: f32[1,1,8], index: 4, kind: output, shape index: {1}]  }
   0x1   :  { %v24_v0 = vld [vmem:[%s209_s1] sm:$0xff]  ;;  %134 = vset.pattern.permute.xlu0 %v157_v1 }
   0x2   :  { %10 = vsyncpa [#allocation3], 0  ;;  %47 = vperm.xlu0 %134, %v24_v0   ;;  %v130_v2 = vld [vmem:[%s210_s2] ss:$0 sm:$0xff]  ;;  %v36_v4 = vlaneseq  ;;  %vm62_vm1 = vcmask 64512   ;;  %vm21_vm2 = vcmask 7168  }
   0x3   :  { %v23_v3 = vld [vmem:[%s208_s0] sm:$0xff]  ;;  %v158_v19 = vmov 0.0   ;;  %vm110_vm3 = vcmask 57344   ;;  %s159_s2 = smov [#allocation2]  }
   0x4   :  { %v59_v5 = vsub.f32 %v23_v3, %v130_v2  ;;  %v37_v6 = vshrl.u32 %v36_v4, 7  ;;  %v41_v7 = vand.u32 127, %v36_v4  ;;  %22 = vst.msk [vmem:[%s211_s3] sm:$0xff] %vm21_vm2, %v158_v19  ;;  %s120_s21 = sshll.u32 %s159_s2, 4  ;;  %s121_s21 = int_to_ptr.vmem [resolvable:$true] %s120_s21 }
   0x5   :  { %s135_s22 = scalar_lea.vmem %s121_s21, 16  ;;  %s139_s23 = scalar_lea.vmem %s121_s21, 32 }
   0x6   :  { %v60_v8 = vmax.f32 %v59_v5, 0.0  ;;  %vm44_vm0 = vcmp.eq.s32.totalorder %v37_v6, %v41_v7  ;;  %p136_p0 = scmp.ne.s32.totalorder %s121_s21, %s135_s22  ;;  %p140_p1 = scmp.lt.s32.totalorder %s121_s21, %s121_s21 }
   0x7   :  { %p141_p2 = scmp.lt.s32.totalorder %s139_s23, %s135_s22 }
   0x8   :  { %v61_v9 = vsel %vm44_vm0, 0.0, %v60_v8 }
   0x9   :  { %v66_v10 = vsel %vm62_vm1, %v61_v9, -inf  ;;  %p142_p3 = por %p141_p2, %p140_p1 }
   0xa   :  { %v67_v11 = vrot.slane %v66_v10, 4 }
   0xb   :  { %p143_p4 = pnand %p142_p3, %p136_p0 }
   0xc   :  { %v68_v14 = vmax.f32 %v66_v10, %v67_v11 }
   0xe   :  { %v69_v18 = vrot.slane %v68_v14, 2 }
  0x10   :  { %v70_v20 = vmax.f32 %v68_v14, %v69_v18 }
  0x12   :  { %v71_v21 = vrot.slane %v70_v20, 1 }
  0x14   :  { %v72_v22 = vmax.f32 %v70_v20, %v71_v21 }
  0x16   :  { %111 = vst.msk [vmem:[#allocation2] sm:$0x1] %vm110_vm3, %v72_v22 }
  0x7d   :  { %v48_v12 = vpop.permute.xlu0 %47 }
  0x7e   :  { %v50_v13 = vsub.f32 %v23_v3, %v48_v12 }
  0x80   :  { %v51_v15 = vmax.f32 %v50_v13, 0.0 }
  0x82   :  { %v52_v16 = vsel %vm44_vm0, 0.0, %v51_v15 }
  0x83   :  { %v63_v17 = vsel %vm62_vm1, %v52_v16, -inf }
  0x84   :  { %64 = vmax.xlane.f32.xlu0 %v63_v17 }
  0x85   :  { %146 = shalt.err (!%p143_p4)
}
  0x86   :  { %123 = dma.vmem_to_hbm [thread:$0]  %s121_s21, 16, %s212_s4, [#allocation3]   ;;  %v106_v23 = vld [vmem:[%s211_s3] sm:$0xff] }
 0x10d   :  { %v65_v24 = vpop.xlane.xlu0 %64 }
 0x10e   :  { %v107_v25 = vmax.f32 %v106_v23, %v65_v24 }
 0x110   :  { %109 = vst.msk [vmem:[%s211_s3] sm:$0xff] %vm21_vm2, %v107_v25 }
 0x111   :  { %155 = dma.done.wait [#allocation3], 16  }
 0x112   :  { %156 = vsyncadd [#allocation3], 4294967280 }
 0x113   :  { %129 = vsyncpa [#allocation3], 1 }

</bundles_post_ra>
